<compile_context>
chip_gen: v6e
topology: v6e:2x2x1
jax: 0.10.0
libtpu: 0.0.40
codegen_flags: <defaults>
</compile_context>

<pallas_src>
import functools

import jax
import jax.numpy as jnp
from jax.experimental import pallas as pl
from jax.experimental.pallas import tpu as pltpu


def _stats_kernel(x_ref, w1_ref, gamma_ref, beta_ref, scale_ref, shift_ref,
                  sum_sc, sq_sc, *, eps, n_total):
    """Pass 1: accumulate per-channel sum / sumsq of h1 = W1 @ x over all tokens;
    on the last grid step emit fused BN (scale, shift) columns."""
    bi = pl.program_id(0)
    si = pl.program_id(1)

    @pl.when((bi == 0) & (si == 0))
    def _():
        sum_sc[...] = jnp.zeros_like(sum_sc)
        sq_sc[...] = jnp.zeros_like(sq_sc)

    # (H, C) @ (C, T) -> (H, T), f32 accumulation on the MXU.
    h1 = jnp.dot(w1_ref[...], x_ref[...], preferred_element_type=jnp.float32)
    sum_sc[...] += jnp.sum(h1, axis=1, keepdims=True)
    sq_sc[...] += jnp.sum(h1 * h1, axis=1, keepdims=True)

    @pl.when((bi == pl.num_programs(0) - 1) & (si == pl.num_programs(1) - 1))
    def _():
        inv_n = 1.0 / n_total
        mean = sum_sc[...] * inv_n                      # (H, 1)
        var = sq_sc[...] * inv_n - mean * mean          # biased variance (f32)
        inv_std = jax.lax.rsqrt(var + eps)
        g = gamma_ref[...].astype(jnp.float32)
        bt = beta_ref[...].astype(jnp.float32)
        scale_ref[...] = g * inv_std
        shift_ref[...] = bt - mean * g * inv_std


def _apply_kernel(x_ref, w1_ref, w2_ref, scale_ref, shift_ref, o_ref):
    """Pass 2: out_tile = W2 @ relu(W1 @ x_tile * scale + shift), channel-major."""
    h1 = jnp.dot(w1_ref[...], x_ref[...], preferred_element_type=jnp.float32)  # (H, T)
    hn = h1 * scale_ref[...] + shift_ref[...]
    ha = jnp.maximum(hn, 0.0).astype(w2_ref.dtype)
    out = jnp.dot(w2_ref[...], ha, preferred_element_type=jnp.float32)          # (C, T)
    o_ref[...] = out.astype(o_ref.dtype)


def _pick_spatial_tile(wh, target=512):
    """Largest multiple-of-128 divisor of wh that is <= target; else full wh."""
    if wh % 128 != 0:
        return wh                     # full dim -> always a legal block shape
    t = min(target, wh)
    t = (t // 128) * 128
    while wh % t != 0:
        t -= 128
    return t


def projection_forward(x, w1, w2, gamma, beta, *, eps=1e-5):
    """x: (b, c, w, h) NCHW.  w1: (H, C), w2: (C, H), gamma/beta: (H,)."""
    b, c, w, h = x.shape
    H = w1.shape[0]
    wh = w * h
    n_total = b * wh

    # Free reshapes only -- no transposes in the wrapper.
    x_cm = x.reshape(b, c, wh)                     # channel-major (NCHW) slab
    gamma_col = gamma.reshape(H, 1)
    beta_col = beta.reshape(H, 1)

    T = _pick_spatial_tile(wh)
    grid = (b, wh // T)
    itemsize = jnp.dtype(x.dtype).itemsize
    w_bytes = (H * c) * jnp.dtype(w1.dtype).itemsize

    # ---------------- Pass 1: global BN statistics -> fused scale/shift -----
    stats_kernel = functools.partial(_stats_kernel, eps=eps, n_total=float(n_total))
    scale, shift = pl.pallas_call(
        stats_kernel,
        out_shape=(jax.ShapeDtypeStruct((H, 1), jnp.float32),
                   jax.ShapeDtypeStruct((H, 1), jnp.float32)),
        grid=grid,
        in_specs=[
            pl.BlockSpec((None, c, T), lambda bi, si: (bi, 0, si)),   # x tile (C, T)
            pl.BlockSpec((H, c), lambda bi, si: (0, 0)),              # W1 resident
            pl.BlockSpec((H, 1), lambda bi, si: (0, 0)),              # gamma
            pl.BlockSpec((H, 1), lambda bi, si: (0, 0)),              # beta
        ],
        out_specs=(pl.BlockSpec((H, 1), lambda bi, si: (0, 0)),
                   pl.BlockSpec((H, 1), lambda bi, si: (0, 0))),
        scratch_shapes=[pltpu.VMEM((H, 1), jnp.float32),
                        pltpu.VMEM((H, 1), jnp.float32)],
        compiler_params=pltpu.CompilerParams(
            dimension_semantics=("arbitrary", "arbitrary"),   # sequential accumulation
            vmem_limit_bytes=48 << 20),
        cost_estimate=pl.CostEstimate(
            flops=2 * n_total * c * H + 4 * n_total * H,
            transcendentals=0,
            bytes_accessed=n_total * c * itemsize + w_bytes),
    )(x_cm, w1, gamma_col, beta_col)

    # ---------------- Pass 2: apply BN + ReLU + second linear ---------------
    out_cm = pl.pallas_call(
        _apply_kernel,
        out_shape=jax.ShapeDtypeStruct((b, c, wh), x.dtype),
        grid=grid,
        in_specs=[
            pl.BlockSpec((None, c, T), lambda bi, si: (bi, 0, si)),   # x tile (C, T)
            pl.BlockSpec((H, c), lambda bi, si: (0, 0)),              # W1 resident
            pl.BlockSpec((c, H), lambda bi, si: (0, 0)),              # W2 resident
            pl.BlockSpec((H, 1), lambda bi, si: (0, 0)),              # scale
            pl.BlockSpec((H, 1), lambda bi, si: (0, 0)),              # shift
        ],
        out_specs=pl.BlockSpec((None, c, T), lambda bi, si: (bi, 0, si)),  # lane-dense
        compiler_params=pltpu.CompilerParams(
            dimension_semantics=("parallel", "parallel"),     # megacore-shardable
            vmem_limit_bytes=48 << 20),
        cost_estimate=pl.CostEstimate(
            flops=4 * n_total * c * H,
            transcendentals=0,
            bytes_accessed=2 * n_total * c * itemsize + 2 * w_bytes),
    )(x_cm, w1, w2, scale, shift)

    return out_cm.reshape(b, c, w, h)


def projection_reference(x, w1, w2, gamma, beta, *, eps=1e-5):
    """Pure-JAX reference mirroring the PyTorch forward (training-mode BN)."""
    b, c, w, h = x.shape
    xt = jnp.transpose(x.reshape(b, c, w * h), (0, 2, 1))           # (b, wh, c)
    h1 = jnp.einsum("bnc,hc->bnh", xt, w1)                          # (b, wh, H)
    mean = jnp.mean(h1, axis=(0, 1), keepdims=True)                 # global per-channel
    var = jnp.mean((h1 - mean) ** 2, axis=(0, 1), keepdims=True)    # biased
    hn = (h1 - mean) / jnp.sqrt(var + eps)
    hn = hn * gamma.reshape(1, 1, -1) + beta.reshape(1, 1, -1)
    hr = jnp.maximum(hn, 0.0)
    out = jnp.einsum("bnh,ch->bnc", hr, w2)                         # (b, wh, c)
    return jnp.transpose(out, (0, 2, 1)).reshape(b, c, w, h)


if __name__ == "__main__":
    # Small shapes consistent with the module: in_dim = c, dim_hidden scaled down.
    b, c, w, h = 2, 32, 16, 16
    dim_hidden = 128

    key = jax.random.PRNGKey(0)
    kx, k1, k2, kg, kb = jax.random.split(key, 5)

    x = jax.random.normal(kx, (b, c, w, h), dtype=jnp.float32)
    w1 = jax.random.normal(k1, (dim_hidden, c), dtype=jnp.float32) * 0.05      # linear1.weight
    w2 = jax.random.normal(k2, (c, dim_hidden), dtype=jnp.float32) * 0.05      # linear2.weight
    gamma = 1.0 + 0.1 * jax.random.normal(kg, (dim_hidden,), dtype=jnp.float32)  # bn.weight
    beta = 0.1 * jax.random.normal(kb, (dim_hidden,), dtype=jnp.float32)          # bn.bias

    out = projection_forward(x, w1, w2, gamma, beta)
    out = jax.block_until_ready(out)

    ref = projection_reference(x, w1, w2, gamma, beta)
    assert out.shape == (b, c, w, h)
    assert jnp.allclose(out, ref, atol=1e-3, rtol=1e-3), "mismatch vs reference"

    print("KERNEL_OK")
</pallas_src>

<mosaic_0001>
module attributes {stable_mosaic.version = 11 : i64} {
  func.func @_stats_kernel(%arg0: i32, %arg1: i32, %arg2: memref<1x32x256xf32, #tpu.memory_space<vmem>>, %arg3: memref<128x32xf32, #tpu.memory_space<vmem>>, %arg4: memref<128x1xf32, #tpu.memory_space<vmem>>, %arg5: memref<128x1xf32, #tpu.memory_space<vmem>>, %arg6: memref<128x1xf32, #tpu.memory_space<vmem>>, %arg7: memref<128x1xf32, #tpu.memory_space<vmem>>, %arg8: memref<128x1xf32, #tpu.memory_space<vmem>>, %arg9: memref<128x1xf32, #tpu.memory_space<vmem>>) attributes {dimension_semantics = [#tpu.dimension_semantics<arbitrary>, #tpu.dimension_semantics<arbitrary>], iteration_bounds = array<i64: 2, 1>, scalar_prefetch = 0 : i64, scratch_operands = 2 : i64, tpu.core_type = #tpu.core_type<tc>, window_params = [{transform_indices = @transform_0, window_bounds = array<i64: 1, 32, 256>}, {pipeline_mode = #tpu.pipeline_mode<synchronous>, transform_indices = @transform_1, window_bounds = array<i64: 128, 32>}, {pipeline_mode = #tpu.pipeline_mode<synchronous>, transform_indices = @transform_2, window_bounds = array<i64: 128, 1>}, {pipeline_mode = #tpu.pipeline_mode<synchronous>, transform_indices = @transform_3, window_bounds = array<i64: 128, 1>}, {pipeline_mode = #tpu.pipeline_mode<synchronous>, transform_indices = @transform_4, window_bounds = array<i64: 128, 1>}, {pipeline_mode = #tpu.pipeline_mode<synchronous>, transform_indices = @transform_5, window_bounds = array<i64: 128, 1>}]} {
    %c0_i32 = arith.constant 0 : i32
    %0 = arith.cmpi eq, %arg0, %c0_i32 : i32
    %c0_i32_0 = arith.constant 0 : i32
    %1 = arith.cmpi eq, %arg1, %c0_i32_0 : i32
    %2 = arith.andi %0, %1 : i1
    %3 = arith.extui %2 : i1 to i32
    %c0_i32_1 = arith.constant 0 : i32
    %4 = arith.cmpi ne, %3, %c0_i32_1 : i32
    scf.if %4 {
      %cst_18 = arith.constant 0.000000e+00 : f32
      %25 = vector.broadcast %cst_18 : f32 to vector<128x1xf32>
      %c0_19 = arith.constant 0 : index
      %c0_20 = arith.constant 0 : index
      %26 = vector.load %arg8[%c0_19, %c0_20] : memref<128x1xf32, #tpu.memory_space<vmem>>, vector<128x1xf32>
      tpu.vector_store %arg8[%c0_19, %c0_20], %25 {strides = array<i32>} : memref<128x1xf32, #tpu.memory_space<vmem>>, vector<128x1xf32>,
      %cst_21 = arith.constant 0.000000e+00 : f32
      %27 = vector.broadcast %cst_21 : f32 to vector<128x1xf32>
      %c0_22 = arith.constant 0 : index
      %c0_23 = arith.constant 0 : index
      %28 = vector.load %arg9[%c0_22, %c0_23] : memref<128x1xf32, #tpu.memory_space<vmem>>, vector<128x1xf32>
      tpu.vector_store %arg9[%c0_22, %c0_23], %27 {strides = array<i32>} : memref<128x1xf32, #tpu.memory_space<vmem>>, vector<128x1xf32>,
    } else {
    }
    %c0 = arith.constant 0 : index
    %c0_2 = arith.constant 0 : index
    %5 = vector.load %arg3[%c0, %c0_2] : memref<128x32xf32, #tpu.memory_space<vmem>>, vector<128x32xf32>
    %c0_3 = arith.constant 0 : index
    %c0_4 = arith.constant 0 : index
    %c0_5 = arith.constant 0 : index
    %6 = vector.load %arg2[%c0_3, %c0_4, %c0_5] : memref<1x32x256xf32, #tpu.memory_space<vmem>>, vector<1x32x256xf32>
    %7 = vector.shape_cast %6 : vector<1x32x256xf32> to vector<32x256xf32>
    %cst = arith.constant dense<0.000000e+00> : vector<128x256xf32>
    %8 = tpu.matmul %5, %7, %cst {dimension_numbers = #tpu.dot_dimension_numbers<[1], [0], [0], [1], [0, 0, 1, 1], [], []>} : vector<128x32xf32>, vector<32x256xf32>, vector<128x256xf32> -> vector<128x256xf32>
    %c0_6 = arith.constant 0 : index
    %c0_7 = arith.constant 0 : index
    %9 = vector.load %arg8[%c0_6, %c0_7] : memref<128x1xf32, #tpu.memory_space<vmem>>, vector<128x1xf32>
    %cst_8 = arith.constant dense<0.000000e+00> : vector<128xf32>
    %10 = vector.multi_reduction <add>, %8, %cst_8 [1] : vector<128x256xf32> to vector<128xf32>
    %11 = vector.shape_cast %10 : vector<128xf32> to vector<128x1xf32>
    %12 = arith.addf %9, %11 : vector<128x1xf32>
    %c0_9 = arith.constant 0 : index
    %c0_10 = arith.constant 0 : index
    %13 = vector.load %arg8[%c0_9, %c0_10] : memref<128x1xf32, #tpu.memory_space<vmem>>, vector<128x1xf32>
    tpu.vector_store %arg8[%c0_9, %c0_10], %12 {strides = array<i32>} : memref<128x1xf32, #tpu.memory_space<vmem>>, vector<128x1xf32>,
    %c0_11 = arith.constant 0 : index
    %c0_12 = arith.constant 0 : index
    %14 = vector.load %arg9[%c0_11, %c0_12] : memref<128x1xf32, #tpu.memory_space<vmem>>, vector<128x1xf32>
    %15 = arith.mulf %8, %8 : vector<128x256xf32>
    %cst_13 = arith.constant dense<0.000000e+00> : vector<128xf32>
    %16 = vector.multi_reduction <add>, %15, %cst_13 [1] : vector<128x256xf32> to vector<128xf32>
    %17 = vector.shape_cast %16 : vector<128xf32> to vector<128x1xf32>
    %18 = arith.addf %14, %17 : vector<128x1xf32>
    %c0_14 = arith.constant 0 : index
    %c0_15 = arith.constant 0 : index
    %19 = vector.load %arg9[%c0_14, %c0_15] : memref<128x1xf32, #tpu.memory_space<vmem>>, vector<128x1xf32>
    tpu.vector_store %arg9[%c0_14, %c0_15], %18 {strides = array<i32>} : memref<128x1xf32, #tpu.memory_space<vmem>>, vector<128x1xf32>,
    %c1_i32 = arith.constant 1 : i32
    %20 = arith.cmpi eq, %arg0, %c1_i32 : i32
    %c0_i32_16 = arith.constant 0 : i32
    %21 = arith.cmpi eq, %arg1, %c0_i32_16 : i32
    %22 = arith.andi %20, %21 : i1
    %23 = arith.extui %22 : i1 to i32
    %c0_i32_17 = arith.constant 0 : i32
    %24 = arith.cmpi ne, %23, %c0_i32_17 : i32
    scf.if %24 {
      %c0_18 = arith.constant 0 : index
      %c0_19 = arith.constant 0 : index
      %25 = vector.load %arg8[%c0_18, %c0_19] : memref<128x1xf32, #tpu.memory_space<vmem>>, vector<128x1xf32>
      %cst_20 = arith.constant 0.001953125 : f32
      %26 = vector.broadcast %cst_20 : f32 to vector<128x1xf32>
      %27 = arith.mulf %25, %26 : vector<128x1xf32>
      %c0_21 = arith.constant 0 : index
      %c0_22 = arith.constant 0 : index
      %28 = vector.load %arg9[%c0_21, %c0_22] : memref<128x1xf32, #tpu.memory_space<vmem>>, vector<128x1xf32>
      %cst_23 = arith.constant 0.001953125 : f32
      %29 = vector.broadcast %cst_23 : f32 to vector<128x1xf32>
      %30 = arith.mulf %28, %29 : vector<128x1xf32>
      %31 = arith.mulf %27, %27 : vector<128x1xf32>
      %32 = arith.subf %30, %31 : vector<128x1xf32>
      %cst_24 = arith.constant 9.99999974E-6 : f32
      %33 = vector.broadcast %cst_24 : f32 to vector<128x1xf32>
      %34 = arith.addf %32, %33 : vector<128x1xf32>
      %35 = math.rsqrt %34 : vector<128x1xf32>
      %c0_25 = arith.constant 0 : index
      %c0_26 = arith.constant 0 : index
      %36 = vector.load %arg4[%c0_25, %c0_26] : memref<128x1xf32, #tpu.memory_space<vmem>>, vector<128x1xf32>
      %c0_27 = arith.constant 0 : index
      %c0_28 = arith.constant 0 : index
      %37 = vector.load %arg5[%c0_27, %c0_28] : memref<128x1xf32, #tpu.memory_space<vmem>>, vector<128x1xf32>
      %38 = arith.mulf %36, %35 : vector<128x1xf32>
      %c0_29 = arith.constant 0 : index
      %c0_30 = arith.constant 0 : index
      %39 = vector.load %arg6[%c0_29, %c0_30] : memref<128x1xf32, #tpu.memory_space<vmem>>, vector<128x1xf32>
      tpu.vector_store %arg6[%c0_29, %c0_30], %38 {strides = array<i32>} : memref<128x1xf32, #tpu.memory_space<vmem>>, vector<128x1xf32>,
      %40 = arith.mulf %27, %36 : vector<128x1xf32>
      %41 = arith.mulf %40, %35 : vector<128x1xf32>
      %42 = arith.subf %37, %41 : vector<128x1xf32>
      %c0_31 = arith.constant 0 : index
      %c0_32 = arith.constant 0 : index
      %43 = vector.load %arg7[%c0_31, %c0_32] : memref<128x1xf32, #tpu.memory_space<vmem>>, vector<128x1xf32>
      tpu.vector_store %arg7[%c0_31, %c0_32], %42 {strides = array<i32>} : memref<128x1xf32, #tpu.memory_space<vmem>>, vector<128x1xf32>,
    } else {
    }
    return
  }
  func.func @transform_0(%arg0: i32, %arg1: i32) -> (i32, i32, i32) {
    %c0_i32 = arith.constant 0 : i32
    %c0_i32_0 = arith.constant 0 : i32
    return %arg0, %c0_i32, %arg1 : i32, i32, i32
  }
  func.func @transform_1(%arg0: i32, %arg1: i32) -> (i32, i32) {
    %c0_i32 = arith.constant 0 : i32
    %c0_i32_0 = arith.constant 0 : i32
    %c0_i32_1 = arith.constant 0 : i32
    return %c0_i32, %c0_i32_0 : i32, i32
  }
  func.func @transform_2(%arg0: i32, %arg1: i32) -> (i32, i32) {
    %c0_i32 = arith.constant 0 : i32
    %c0_i32_0 = arith.constant 0 : i32
    %c0_i32_1 = arith.constant 0 : i32
    return %c0_i32, %c0_i32_0 : i32, i32
  }
  func.func @transform_3(%arg0: i32, %arg1: i32) -> (i32, i32) {
    %c0_i32 = arith.constant 0 : i32
    %c0_i32_0 = arith.constant 0 : i32
    %c0_i32_1 = arith.constant 0 : i32
    return %c0_i32, %c0_i32_0 : i32, i32
  }
  func.func @transform_4(%arg0: i32, %arg1: i32) -> (i32, i32) {
    %c0_i32 = arith.constant 0 : i32
    %c0_i32_0 = arith.constant 0 : i32
    %c0_i32_1 = arith.constant 0 : i32
    return %c0_i32, %c0_i32_0 : i32, i32
  }
  func.func @transform_5(%arg0: i32, %arg1: i32) -> (i32, i32) {
    %c0_i32 = arith.constant 0 : i32
    %c0_i32_0 = arith.constant 0 : i32
    %c0_i32_1 = arith.constant 0 : i32
    return %c0_i32, %c0_i32_0 : i32, i32
  }
}

</mosaic_0001>

<bundles_post_ra>
// kernel: tpu_custom_call.1
= control target key start
LH: loop header
LB: loop body
LE: loop exit
PB: predicated region body
PF: predicated region fallthrough
CT: control target
= control target key end

     0   :  { %s1194_s18 = smov 0   ;;  %s1196_s19 = smov 0   ;;  %s1726_s0 = inlined_call_operand.vmem [shape: f32[2,32,256], index: 0, kind: input, shape index: {}]   ;;  %s1727_s1 = inlined_call_operand.vmem [shape: f32[128,32], index: 1, kind: input, shape index: {}]   ;;  %s1728_s2 = inlined_call_operand.vmem [shape: f32[128,1], index: 2, kind: input, shape index: {}]   ;;  %s1729_s3 = inlined_call_operand.vmem [shape: f32[128,1], index: 3, kind: input, shape index: {}]   ;;  %s1730_s4 = inlined_call_operand.vmem [shape: f32[128,1], index: 4, kind: output, shape index: {0}]   ;;  %s1731_s5 = inlined_call_operand.vmem [shape: f32[128,1], index: 5, kind: output, shape index: {1}]  }
   0x1   :  { %s1198_s20 = smov 0  }
   0x2 LB: > { %s28_s21 = sadd.s32 1, %s1156_s19  ;;  %p1046_p0 = scmp.ge.s32.totalorder %s1160_s20, 1  ;;  %s1160_s20 = sphi %s1198_s20, %s16_s20   ;;  %s1156_s19 = sphi %s1196_s19, %s1733_s19   ;;  %s1152_s18 = sphi %s1194_s18, %s1732_s18  }
   0x3   : > { %p30_p1 = scmp.ge.s32.totalorder %s28_s21, 2  ;;  %p199_p2 = scmp.lt.s32.totalorder %s1160_s20, 3 }
   0x5   : > { %s1735_s21 = smov (%p30_p1, %s28_s21), 0  ;;  %p200_p3 = pnand %p1046_p0, %p199_p2 }
   0x6   : > { %p227_p4 = scmp.lt.s32.totalorder (!%p200_p3), %s1152_s18, 1  ;;  %p236_p5 = scmp.eq.s32.totalorder (!%p200_p3), %s1152_s18, 0 }
   0x7   : > { %203 = sbr.rel (%p200_p3) target bundleno = 480 (0x1e0), region = 36 }
   0xc   : > { %s228_s22 = scalar_select %p227_p4, %s1152_s18, 1  ;;  %vm242_vm0 = vcmask (%p236_p5), 7168   ;;  %v1162_v0 = vmov (%p236_p5), 0.0  }
   0xd   : > { %241 = sbr.rel (!%p236_p5) target bundleno = 29 (0x1d), region = 40  ;;  %243 = vst.msk [vmem:[#allocation2] sm:$0xff] (%p236_p5), %vm242_vm0, %v1162_v0  ;;  %244 = vst.msk [vmem:[#allocation2 + $0x8] sm:$0xff] (%p236_p5), %vm242_vm0, %v1162_v0 }
   0xe   : > { %s1069_s23 = sshll.u32 %s228_s22, 6  ;;  %245 = vst.msk [vmem:[#allocation2 + $0x10] sm:$0xff] (%p236_p5), %vm242_vm0, %v1162_v0  ;;  %246 = vst.msk [vmem:[#allocation2 + $0x18] sm:$0xff] (%p236_p5), %vm242_vm0, %v1162_v0 }
   0xf   : > { %s1220_s26 = scalar_lea.vmem %s1726_s0, %s1069_s23  ;;  %247 = vst.msk [vmem:[#allocation2 + $0x20] sm:$0xff] (%p236_p5), %vm242_vm0, %v1162_v0  ;;  %248 = vst.msk [vmem:[#allocation2 + $0x28] sm:$0xff] (%p236_p5), %vm242_vm0, %v1162_v0 }
  0x10   : > { %249 = vst.msk [vmem:[#allocation2 + $0x30] sm:$0xff] (%p236_p5), %vm242_vm0, %v1162_v0  ;;  %250 = vst.msk [vmem:[#allocation2 + $0x38] sm:$0xff] (%p236_p5), %vm242_vm0, %v1162_v0 }
  0x11   : > { %251 = vst.msk [vmem:[#allocation2 + $0x40] sm:$0xff] (%p236_p5), %vm242_vm0, %v1162_v0  ;;  %252 = vst.msk [vmem:[#allocation2 + $0x48] sm:$0xff] (%p236_p5), %vm242_vm0, %v1162_v0 }
  0x12   : > { %253 = vst.msk [vmem:[#allocation2 + $0x50] sm:$0xff] %vm242_vm0, %v1162_v0  ;;  %254 = vst.msk [vmem:[#allocation2 + $0x58] sm:$0xff] %vm242_vm0, %v1162_v0 }
  0x13   : > { %255 = vst.msk [vmem:[#allocation2 + $0x60] sm:$0xff] %vm242_vm0, %v1162_v0  ;;  %256 = vst.msk [vmem:[#allocation2 + $0x68] sm:$0xff] %vm242_vm0, %v1162_v0 }
  0x14   : > { %257 = vst.msk [vmem:[#allocation2 + $0x70] sm:$0xff] %vm242_vm0, %v1162_v0  ;;  %258 = vst.msk [vmem:[#allocation2 + $0x78] sm:$0xff] %vm242_vm0, %v1162_v0 }
  0x15   : > { %259 = vst.msk [vmem:[#allocation3] sm:$0xff] %vm242_vm0, %v1162_v0  ;;  %260 = vst.msk [vmem:[#allocation3 + $0x8] sm:$0xff] %vm242_vm0, %v1162_v0 }
  0x16   : > { %261 = vst.msk [vmem:[#allocation3 + $0x10] sm:$0xff] %vm242_vm0, %v1162_v0  ;;  %262 = vst.msk [vmem:[#allocation3 + $0x18] sm:$0xff] %vm242_vm0, %v1162_v0 }
  0x17   : > { %263 = vst.msk [vmem:[#allocation3 + $0x20] sm:$0xff] %vm242_vm0, %v1162_v0  ;;  %264 = vst.msk [vmem:[#allocation3 + $0x28] sm:$0xff] %vm242_vm0, %v1162_v0 }
  0x18   : > { %265 = vst.msk [vmem:[#allocation3 + $0x30] sm:$0xff] %vm242_vm0, %v1162_v0  ;;  %266 = vst.msk [vmem:[#allocation3 + $0x38] sm:$0xff] %vm242_vm0, %v1162_v0 }
  0x19   : > { %267 = vst.msk [vmem:[#allocation3 + $0x40] sm:$0xff] %vm242_vm0, %v1162_v0  ;;  %268 = vst.msk [vmem:[#allocation3 + $0x48] sm:$0xff] %vm242_vm0, %v1162_v0 }
  0x1a   : > { %269 = vst.msk [vmem:[#allocation3 + $0x50] sm:$0xff] %vm242_vm0, %v1162_v0  ;;  %270 = vst.msk [vmem:[#allocation3 + $0x58] sm:$0xff] %vm242_vm0, %v1162_v0 }
  0x1b   : > { %271 = vst.msk [vmem:[#allocation3 + $0x60] sm:$0xff] %vm242_vm0, %v1162_v0  ;;  %272 = vst.msk [vmem:[#allocation3 + $0x68] sm:$0xff] %vm242_vm0, %v1162_v0 }
  0x1c   : > { %273 = vst.msk [vmem:[#allocation3 + $0x70] sm:$0xff] %vm242_vm0, %v1162_v0  ;;  %274 = vst.msk [vmem:[#allocation3 + $0x78] sm:$0xff] %vm242_vm0, %v1162_v0 }
  0x1d PF: > { %v298_v1 = vld [vmem:[%s1220_s26 + $0x38] sm:$0xff]  ;;  %v297_v2 = vld [vmem:[%s1220_s26 + $0x30] sm:$0xff]  ;;  %v296_v3 = vld [vmem:[%s1220_s26 + $0x28] sm:$0xff]  ;;  %vm299_vm1 = vcmask 261120   ;;  %v1163_v11 = vmov 0.0   ;;  %p734_p6 = scmp.eq.s32.totalorder %s1152_s18, 1 }
  0x1e   : > { %372 = vmatprep.subr.mxu0 %v298_v1  ;;  %1072 = vmatprep.subr.mxu1 %v298_v1  ;;  %v295_v4 = vld [vmem:[%s1220_s26 + $0x20] sm:$0xff]  ;;  %v294_v5 = vld [vmem:[%s1220_s26 + $0x18] sm:$0xff]  ;;  %v293_v6 = vld [vmem:[%s1220_s26 + $0x10] sm:$0xff]  ;;  %vm589_vm2 = vcmask 7168  }
  0x1f   : > { %373 = vmatpush1.msra.mxu0 %v297_v2  ;;  %1076 = vmatpush1.msra.mxu1 %v297_v2  ;;  %v292_v7 = vld [vmem:[%s1220_s26 + $0x8] sm:$0xff]  ;;  %v291_v8 = vld [vmem:[%s1220_s26] sm:$0xff]  ;;  %v277_v14 = vld [vmem:[%s1727_s1 + $0x10] sm:$0xff] }
  0x20   : > { %374 = vmatprep.subr.mxu0 %v296_v3  ;;  %1073 = vmatprep.subr.mxu1 %v296_v3  ;;  %v275_v9 = vld [vmem:[%s1727_s1] sm:$0xff]  ;;  %v276_v12 = vld [vmem:[%s1727_s1 + $0x8] sm:$0xff]  ;;  %v285_v15 = vld [vmem:[%s1727_s1 + $0x50] sm:$0xff] }
  0x21   : > { %375 = vmatpush1.msra.mxu0 %v295_v4  ;;  %1077 = vmatpush1.msra.mxu1 %v295_v4  ;;  %v283_v10 = vld [vmem:[%s1727_s1 + $0x40] sm:$0xff]  ;;  %v284_v13 = vld [vmem:[%s1727_s1 + $0x48] sm:$0xff]  ;;  %v278_v16 = vld [vmem:[%s1727_s1 + $0x18] sm:$0xff] }
  0x22   : > { %376 = vmatprep.subr.mxu0 %v294_v5  ;;  %1074 = vmatprep.subr.mxu1 %v294_v5  ;;  %v286_v17 = vld [vmem:[%s1727_s1 + $0x58] sm:$0xff]  ;;  %v279_v18 = vld [vmem:[%s1727_s1 + $0x20] sm:$0xff]  ;;  %v280_v20 = vld [vmem:[%s1727_s1 + $0x28] sm:$0xff] }
  0x23   : > { %377 = vmatpush1.msra.mxu0 %v293_v6  ;;  %1078 = vmatpush1.msra.mxu1 %v293_v6  ;;  %v287_v19 = vld [vmem:[%s1727_s1 + $0x60] sm:$0xff]  ;;  %v288_v21 = vld [vmem:[%s1727_s1 + $0x68] sm:$0xff]  ;;  %v281_v22 = vld [vmem:[%s1727_s1 + $0x30] sm:$0xff] }
  0x24   : > { %378 = vmatprep.subr.mxu0 %v292_v7  ;;  %1075 = vmatprep.subr.mxu1 %v292_v7  ;;  %v289_v23 = vld [vmem:[%s1727_s1 + $0x70] sm:$0xff]  ;;  %v282_v24 = vld [vmem:[%s1727_s1 + $0x38] sm:$0xff] }
  0x25   : > { %379 = vmatpush1.msra.mxu0 %v291_v8  ;;  %1079 = vmatpush1.msra.mxu1 %v291_v8  ;;  %v290_v25 = vld [vmem:[%s1727_s1 + $0x78] sm:$0xff] }
  0x26   : > { %412 = vmatprep.mubr.f32.mxu0 %v1163_v11  ;;  %460 = vmatprep.mubr.f32.mxu1 %v1163_v11 }
  0x27   : > { %1050 = vmatmul.mubr.msk.f32.vlgmr.msra.gmra.mxu0 %vm299_vm1, %v275_v9  ;;  %1058 = vmatmul.mubr.msk.f32.vlgmr.msra.gmra.mxu1 %vm299_vm1, %v283_v10 }
  0x28   : > { %418 = vmatprep.mubr.f32.mxu0 %v1163_v11  ;;  %466 = vmatprep.mubr.f32.mxu1 %v1163_v11 }
  0x2b   : > { %1051 = vmatmul.mubr.msk.f32.gmra.mxu0 %vm299_vm1, %v276_v12  ;;  %1059 = vmatmul.mubr.msk.f32.gmra.mxu1 %vm299_vm1, %v284_v13 }
  0x2c   : > { %424 = vmatprep.mubr.f32.mxu0 %v1163_v11  ;;  %472 = vmatprep.mubr.f32.mxu1 %v1163_v11 }
  0x2f   : > { %1052 = vmatmul.mubr.msk.f32.gmra.mxu0 %vm299_vm1, %v277_v14  ;;  %1060 = vmatmul.mubr.msk.f32.gmra.mxu1 %vm299_vm1, %v285_v15 }
  0x30   : > { %430 = vmatprep.mubr.f32.mxu0 %v1163_v11  ;;  %478 = vmatprep.mubr.f32.mxu1 %v1163_v11 }
  0x33   : > { %1053 = vmatmul.mubr.msk.f32.gmra.mxu0 %vm299_vm1, %v278_v16  ;;  %1061 = vmatmul.mubr.msk.f32.gmra.mxu1 %vm299_vm1, %v286_v17 }
  0x34   : > { %436 = vmatprep.mubr.f32.mxu0 %v1163_v11  ;;  %484 = vmatprep.mubr.f32.mxu1 %v1163_v11 }
  0x37   : > { %1054 = vmatmul.mubr.msk.f32.gmra.mxu0 %vm299_vm1, %v279_v18  ;;  %1062 = vmatmul.mubr.msk.f32.gmra.mxu1 %vm299_vm1, %v287_v19 }
  0x38   : > { %442 = vmatprep.mubr.f32.mxu0 %v1163_v11  ;;  %490 = vmatprep.mubr.f32.mxu1 %v1163_v11 }
  0x3b   : > { %1055 = vmatmul.mubr.msk.f32.gmra.mxu0 %vm299_vm1, %v280_v20  ;;  %1063 = vmatmul.mubr.msk.f32.gmra.mxu1 %vm299_vm1, %v288_v21 }
  0x3c   : > { %448 = vmatprep.mubr.f32.mxu0 %v1163_v11  ;;  %496 = vmatprep.mubr.f32.mxu1 %v1163_v11 }
  0x3f   : > { %1056 = vmatmul.mubr.msk.f32.gmra.mxu0 %vm299_vm1, %v281_v22  ;;  %1064 = vmatmul.mubr.msk.f32.gmra.mxu1 %vm299_vm1, %v289_v23 }
  0x40   : > { %454 = vmatprep.mubr.f32.mxu0 %v1163_v11  ;;  %502 = vmatprep.mubr.f32.mxu1 %v1163_v11 }
  0x43   : > { %1057 = vmatmul.mubr.msk.f32.gmra.mxu0 %vm299_vm1, %v282_v24  ;;  %1065 = vmatmul.mubr.msk.f32.gmra.mxu1 %vm299_vm1, %v290_v25 }
  0xe7   : > { %v414_v26 = vpop.f32.mrf.mxu0  ;;  %v462_v27 = vpop.f32.mrf.mxu1 }
  0xe8   : > { %v622_v33 = vmul.f32 %v414_v26, %v414_v26  ;;  %v638_v48 = vmul.f32 %v462_v27, %v462_v27 }
  0xe9   : > { %v416_v28 = vpop.f32.mrf.mxu0  ;;  %v464_v29 = vpop.f32.mrf.mxu1 }
  0xea   : > { %v525_v30 = vadd.f32 %v416_v28, %v414_v26  ;;  %v623_v34 = vmul.f32 %v416_v28, %v416_v28  ;;  %v549_v40 = vadd.f32 %v464_v29, %v462_v27  ;;  %v639_v42 = vmul.f32 %v464_v29, %v464_v29 }
  0xeb   : > { %v420_v31 = vpop.f32.mrf.mxu0  ;;  %v468_v32 = vpop.f32.mrf.mxu1 }
  0xec   : > { %526 = vadd.xlane.f32.xlu0 %v525_v30  ;;  %v624_v37 = vmul.f32 %v420_v31, %v420_v31  ;;  %v654_v44 = vadd.f32 %v623_v34, %v622_v33  ;;  %v640_v49 = vmul.f32 %v468_v32, %v468_v32  ;;  %v678_v50 = vadd.f32 %v639_v42, %v638_v48 }
  0xed   : > { %v422_v35 = vpop.f32.mrf.mxu0  ;;  %v470_v36 = vpop.f32.mrf.mxu1 }
  0xee   : > { %v625_v38 = vmul.f32 %v422_v35, %v422_v35  ;;  %v552_v39 = vadd.f32 %v470_v36, %v468_v32  ;;  %v641_v43 = vmul.f32 %v470_v36, %v470_v36  ;;  %v528_v54 = vadd.f32 %v422_v35, %v420_v31 }
  0xef   : > { %v426_v41 = vpop.f32.mrf.mxu0  ;;  %v474_v47 = vpop.f32.mrf.mxu1 }
  0xf0   : > { %553 = vadd.xlane.f32.xlu1 %v552_v39  ;;  %550 = vadd.xlane.f32.xlu0 %v549_v40  ;;  %v657_v45 = vadd.f32 %v625_v38, %v624_v37  ;;  %v681_v51 = vadd.f32 %v641_v43, %v640_v49  ;;  %v626_v58 = vmul.f32 %v426_v41, %v426_v41 }
  0xf1   : > { %v428_v46 = vpop.f32.mrf.mxu0  ;;  %v476_v53 = vpop.f32.mrf.mxu1  ;;  %v642_v0 = vmul.f32 %v474_v47, %v474_v47 }
  0xf2   : > { %v531_v55 = vadd.f32 %v428_v46, %v426_v41  ;;  %v627_v59 = vmul.f32 %v428_v46, %v428_v46  ;;  %v555_v60 = vadd.f32 %v476_v53, %v474_v47  ;;  %v643_v1 = vmul.f32 %v476_v53, %v476_v53 }
  0xf3   : > { %v432_v52 = vpop.f32.mrf.mxu0  ;;  %v480_v57 = vpop.f32.mrf.mxu1 }
  0xf4   : > { %655 = vadd.xlane.f32.xlu0 %v654_v44  ;;  %658 = vadd.xlane.f32.xlu1 %v657_v45  ;;  %v628_v2 = vmul.f32 %v432_v52, %v432_v52  ;;  %v660_v4 = vadd.f32 %v627_v59, %v626_v58  ;;  %v644_v8 = vmul.f32 %v480_v57, %v480_v57  ;;  %v509_v58 = vld [vmem:[#allocation2] sm:$0xff] }
  0xf5   : > { %v434_v56 = vpop.f32.mrf.mxu0  ;;  %v482_v62 = vpop.f32.mrf.mxu1  ;;  %v684_v10 = vadd.f32 %v643_v1, %v642_v0 }
  0xf6   : > { %v534_v61 = vadd.f32 %v434_v56, %v432_v52  ;;  %v629_v3 = vmul.f32 %v434_v56, %v434_v56  ;;  %v558_v5 = vadd.f32 %v482_v62, %v480_v57  ;;  %v645_v9 = vmul.f32 %v482_v62, %v482_v62  ;;  %v517_v62 = vld [vmem:[#allocation2 + $0x40] sm:$0xff] }
  0xf7   : > { %v438_v63 = vpop.f32.mrf.mxu0  ;;  %v486_v7 = vpop.f32.mrf.mxu1 }
  0xf8   : > { %679 = vadd.xlane.f32.xlu0 %v678_v50  ;;  %682 = vadd.xlane.f32.xlu1 %v681_v51  ;;  %v663_v11 = vadd.f32 %v629_v3, %v628_v2  ;;  %v687_v14 = vadd.f32 %v645_v9, %v644_v8  ;;  %v630_v18 = vmul.f32 %v438_v63, %v438_v63  ;;  %v606_v3 = vld [vmem:[#allocation3] sm:$0xff] }
  0xf9   : > { %v440_v6 = vpop.f32.mrf.mxu0  ;;  %v488_v13 = vpop.f32.mrf.mxu1  ;;  %v646_v24 = vmul.f32 %v486_v7, %v486_v7  ;;  %v614_v9 = vld [vmem:[#allocation3 + $0x40] sm:$0xff] }
  0xfa   : > { %v537_v15 = vadd.f32 %v440_v6, %v438_v63  ;;  %v631_v19 = vmul.f32 %v440_v6, %v440_v6  ;;  %v561_v20 = vadd.f32 %v488_v13, %v486_v7  ;;  %v647_v25 = vmul.f32 %v488_v13, %v488_v13 }
  0xfb   : > { %v444_v12 = vpop.f32.mrf.mxu0  ;;  %v492_v17 = vpop.f32.mrf.mxu1 }
  0xfc   : > { %529 = vadd.xlane.f32.xlu0 %v528_v54  ;;  %532 = vadd.xlane.f32.xlu1 %v531_v55  ;;  %v632_v26 = vmul.f32 %v444_v12, %v444_v12  ;;  %v666_v28 = vadd.f32 %v631_v19, %v630_v18  ;;  %v648_v32 = vmul.f32 %v492_v17, %v492_v17 }
  0xfd   : > { %v446_v16 = vpop.f32.mrf.mxu0  ;;  %v494_v22 = vpop.f32.mrf.mxu1  ;;  %v690_v34 = vadd.f32 %v647_v25, %v646_v24 }
  0xfe   : > { %v540_v21 = vadd.f32 %v446_v16, %v444_v12  ;;  %v633_v27 = vmul.f32 %v446_v16, %v446_v16  ;;  %v564_v29 = vadd.f32 %v494_v22, %v492_v17  ;;  %v649_v33 = vmul.f32 %v494_v22, %v494_v22  ;;  %v511_v16 = vld [vmem:[#allocation2 + $0x10] sm:$0xff]  ;;  %v512_v22 = vld [vmem:[#allocation2 + $0x18] sm:$0xff] }
  0xff   : > { %v450_v23 = vpop.f32.mrf.mxu0  ;;  %v498_v31 = vpop.f32.mrf.mxu1 }
 0x100   : > { %556 = vadd.xlane.f32.xlu0 %v555_v60  ;;  %535 = vadd.xlane.f32.xlu1 %v534_v61  ;;  %v669_v35 = vadd.f32 %v633_v27, %v632_v26  ;;  %v693_v38 = vadd.f32 %v649_v33, %v648_v32  ;;  %v634_v42 = vmul.f32 %v450_v23, %v450_v23  ;;  %v518_v61 = vld [vmem:[#allocation2 + $0x48] sm:$0xff]  ;;  %v608_v27 = vld [vmem:[#allocation3 + $0x10] sm:$0xff] }
 0x101   : > { %v452_v30 = vpop.f32.mrf.mxu0  ;;  %v500_v37 = vpop.f32.mrf.mxu1  ;;  %v650_v47 = vmul.f32 %v498_v31, %v498_v31  ;;  %v616_v33 = vld [vmem:[#allocation3 + $0x50] sm:$0xff] }
 0x102   : > { %v543_v39 = vadd.f32 %v452_v30, %v450_v23  ;;  %v635_v43 = vmul.f32 %v452_v30, %v452_v30  ;;  %v567_v45 = vadd.f32 %v500_v37, %v498_v31  ;;  %v651_v48 = vmul.f32 %v500_v37, %v500_v37 }
 0x103   : > { %v456_v36 = vpop.f32.mrf.mxu0  ;;  %v504_v41 = vpop.f32.mrf.mxu1 }
 0x104   : > { %661 = vadd.xlane.f32.xlu0 %v660_v4  ;;  %559 = vadd.xlane.f32.xlu1 %v558_v5  ;;  %v636_v49 = vmul.f32 %v456_v36, %v456_v36  ;;  %v672_v52 = vadd.f32 %v635_v43, %v634_v42  ;;  %v652_v53 = vmul.f32 %v504_v41, %v504_v41  ;;  %v607_v4 = vld [vmem:[#allocation3 + $0x8] sm:$0xff] }
 0x105   : > { %v458_v40 = vpop.f32.mrf.mxu0  ;;  %v506_v46 = vpop.f32.mrf.mxu1  ;;  %v696_v55 = vadd.f32 %v651_v48, %v650_v47 }
 0x106   : > { %v546_v44 = vadd.f32 %v458_v40, %v456_v36  ;;  %v637_v50 = vmul.f32 %v458_v40, %v458_v40  ;;  %v570_v51 = vadd.f32 %v506_v46, %v504_v41  ;;  %v653_v54 = vmul.f32 %v506_v46, %v506_v46  ;;  %v513_v40 = vld [vmem:[#allocation2 + $0x20] sm:$0xff]  ;;  %v514_v46 = vld [vmem:[#allocation2 + $0x28] sm:$0xff] }
 0x108   : > { %685 = vadd.xlane.f32.xlu0 %v684_v10  ;;  %664 = vadd.xlane.f32.xlu1 %v663_v11  ;;  %v675_v56 = vadd.f32 %v637_v50, %v636_v49  ;;  %v699_v57 = vadd.f32 %v653_v54, %v652_v53  ;;  %v615_v10 = vld [vmem:[#allocation3 + $0x48] sm:$0xff] }
 0x10c   : > { %688 = vadd.xlane.f32.xlu1 %v687_v14  ;;  %538 = vadd.xlane.f32.xlu0 %v537_v15  ;;  %v510_v15 = vld [vmem:[#allocation2 + $0x8] sm:$0xff] }
 0x110   : > { %562 = vadd.xlane.f32.xlu0 %v561_v20  ;;  %541 = vadd.xlane.f32.xlu1 %v540_v21  ;;  %v519_v21 = vld [vmem:[#allocation2 + $0x50] sm:$0xff] }
 0x114   : > { %667 = vadd.xlane.f32.xlu0 %v666_v28  ;;  %565 = vadd.xlane.f32.xlu1 %v564_v29  ;;  %v520_v28 = vld [vmem:[#allocation2 + $0x58] sm:$0xff] }
 0x118   : > { %691 = vadd.xlane.f32.xlu0 %v690_v34  ;;  %670 = vadd.xlane.f32.xlu1 %v669_v35  ;;  %v609_v34 = vld [vmem:[#allocation3 + $0x18] sm:$0xff] }
 0x11c   : > { %694 = vadd.xlane.f32.xlu1 %v693_v38  ;;  %544 = vadd.xlane.f32.xlu0 %v543_v39  ;;  %v617_v39 = vld [vmem:[#allocation3 + $0x58] sm:$0xff] }
 0x120   : > { %568 = vadd.xlane.f32.xlu0 %v567_v45  ;;  %547 = vadd.xlane.f32.xlu1 %v546_v44  ;;  %v521_v45 = vld [vmem:[#allocation2 + $0x60] sm:$0xff] }
 0x124   : > { %673 = vadd.xlane.f32.xlu0 %v672_v52  ;;  %571 = vadd.xlane.f32.xlu1 %v570_v51  ;;  %v610_v51 = vld [vmem:[#allocation3 + $0x20] sm:$0xff]  ;;  %v522_v52 = vld [vmem:[#allocation2 + $0x68] sm:$0xff] }
 0x128   : > { %697 = vadd.xlane.f32.xlu0 %v696_v55  ;;  %676 = vadd.xlane.f32.xlu1 %v675_v56 }
 0x12c   : > { %700 = vadd.xlane.f32.xlu1 %v699_v57  ;;  %v618_v57 = vld [vmem:[#allocation3 + $0x60] sm:$0xff] }
 0x175   : > { %v527_v59 = vpop.xlane.xlu0 %526 }
 0x176   : > { %v573_v60 = vadd.f32 %v527_v59, %v509_v58  ;;  %v611_v58 = vld [vmem:[#allocation3 + $0x28] sm:$0xff] }
 0x178   : > { %590 = vst.msk [vmem:[#allocation2] sm:$0xff] %vm589_vm2, %v573_v60 }
 0x179   : > { %v554_v63 = vpop.xlane.xlu1 %553  ;;  %v551_v0 = vpop.xlane.xlu0 %550 }
 0x17a   : > { %v582_v1 = vadd.f32 %v554_v63, %v518_v61  ;;  %v581_v2 = vadd.f32 %v551_v0, %v517_v62  ;;  %v619_v63 = vld [vmem:[#allocation3 + $0x68] sm:$0xff]  ;;  %v515_v0 = vld [vmem:[#allocation2 + $0x30] sm:$0xff] }
 0x17c   : > { %599 = vst.msk [vmem:[#allocation2 + $0x48] sm:$0xff] %vm589_vm2, %v582_v1  ;;  %598 = vst.msk [vmem:[#allocation2 + $0x40] sm:$0xff] %vm589_vm2, %v581_v2 }
 0x17d   : > { %v656_v5 = vpop.xlane.xlu0 %655  ;;  %v659_v6 = vpop.xlane.xlu1 %658 }
 0x17e   : > { %v702_v7 = vadd.f32 %v656_v5, %v606_v3  ;;  %v703_v8 = vadd.f32 %v659_v6, %v607_v4  ;;  %v523_v5 = vld [vmem:[#allocation2 + $0x70] sm:$0xff]  ;;  %v516_v6 = vld [vmem:[#allocation2 + $0x38] sm:$0xff] }
 0x180   : > { %718 = vst.msk [vmem:[#allocation3] sm:$0xff] %vm589_vm2, %v702_v7  ;;  %719 = vst.msk [vmem:[#allocation3 + $0x8] sm:$0xff] %vm589_vm2, %v703_v8 }
 0x181   : > { %v680_v11 = vpop.xlane.xlu0 %679  ;;  %v683_v12 = vpop.xlane.xlu1 %682 }
 0x182   : > { %v710_v13 = vadd.f32 %v680_v11, %v614_v9  ;;  %v711_v14 = vadd.f32 %v683_v12, %v615_v10  ;;  %v612_v11 = vld [vmem:[#allocation3 + $0x30] sm:$0xff]  ;;  %v524_v12 = vld [vmem:[#allocation2 + $0x78] sm:$0xff] }
 0x184   : > { %726 = vst.msk [vmem:[#allocation3 + $0x40] sm:$0xff] %vm589_vm2, %v710_v13  ;;  %727 = vst.msk [vmem:[#allocation3 + $0x48] sm:$0xff] %vm589_vm2, %v711_v14 }
 0x185   : > { %v530_v17 = vpop.xlane.xlu0 %529  ;;  %v533_v18 = vpop.xlane.xlu1 %532 }
 0x186   : > { %v574_v19 = vadd.f32 %v530_v17, %v510_v15  ;;  %v575_v20 = vadd.f32 %v533_v18, %v511_v16  ;;  %v620_v17 = vld [vmem:[#allocation3 + $0x70] sm:$0xff]  ;;  %v613_v18 = vld [vmem:[#allocation3 + $0x38] sm:$0xff] }
 0x188   : > { %591 = vst.msk [vmem:[#allocation2 + $0x8] sm:$0xff] %vm589_vm2, %v574_v19  ;;  %592 = vst.msk [vmem:[#allocation2 + $0x10] sm:$0xff] %vm589_vm2, %v575_v20 }
 0x189   : > { %v557_v23 = vpop.xlane.xlu0 %556  ;;  %v536_v24 = vpop.xlane.xlu1 %535 }
 0x18a   : > { %v583_v25 = vadd.f32 %v557_v23, %v519_v21  ;;  %v576_v26 = vadd.f32 %v536_v24, %v512_v22  ;;  %v621_v23 = vld [vmem:[#allocation3 + $0x78] sm:$0xff] }
 0x18c   : > { %600 = vst.msk [vmem:[#allocation2 + $0x50] sm:$0xff] %vm589_vm2, %v583_v25  ;;  %593 = vst.msk [vmem:[#allocation2 + $0x18] sm:$0xff] %vm589_vm2, %v576_v26  ;;  %v739_v26 = vld [vmem:[#allocation2] sm:$0xff] (%p734_p6) }
 0x18d   : > { %v662_v29 = vpop.xlane.xlu0 %661  ;;  %v560_v30 = vpop.xlane.xlu1 %559 }
 0x18e   : > { %v704_v31 = vadd.f32 %v662_v29, %v608_v27  ;;  %v584_v32 = vadd.f32 %v560_v30, %v520_v28  ;;  %v771_v27 = vld [vmem:[#allocation3] sm:$0xff] (%p734_p6)  ;;  %v755_v28 = vmul.f32 (%p734_p6), 0.001953125, %v739_v26 }
 0x18f   : > { %v787_v29 = vmul.f32 (%p734_p6), 0.001953125, %v771_v27  ;;  %v740_v30 = vld [vmem:[#allocation2 + $0x8] sm:$0xff] (%p734_p6) }
 0x190   : > { %720 = vst.msk [vmem:[#allocation3 + $0x10] sm:$0xff] %vm589_vm2, %v704_v31  ;;  %601 = vst.msk [vmem:[#allocation2 + $0x58] sm:$0xff] %vm589_vm2, %v584_v32  ;;  %v772_v31 = vld [vmem:[#allocation3 + $0x8] sm:$0xff] (%p734_p6)  ;;  %v756_v32 = vmul.f32 (%p734_p6), 0.001953125, %v740_v30 }
 0x191   : > { %v686_v35 = vpop.xlane.xlu0 %685  ;;  %v665_v36 = vpop.xlane.xlu1 %664 }
 0x192   : > { %v712_v37 = vadd.f32 %v686_v35, %v616_v33  ;;  %v705_v38 = vadd.f32 %v665_v36, %v609_v34  ;;  %v788_v33 = vmul.f32 (%p734_p6), 0.001953125, %v772_v31  ;;  %v741_v34 = vld [vmem:[#allocation2 + $0x10] sm:$0xff] (%p734_p6)  ;;  %v803_v36 = vmul.f32 (%p734_p6), %v755_v28, %v755_v28 }
 0x194   : > { %728 = vst.msk [vmem:[#allocation3 + $0x50] sm:$0xff] %vm589_vm2, %v712_v37  ;;  %721 = vst.msk [vmem:[#allocation3 + $0x18] sm:$0xff] %vm589_vm2, %v705_v38  ;;  %v757_v37 = vmul.f32 (%p734_p6), 0.001953125, %v741_v34 }
 0x195   : > { %v689_v41 = vpop.xlane.xlu1 %688  ;;  %v539_v42 = vpop.xlane.xlu0 %538 }
 0x196   : > { %v713_v43 = vadd.f32 %v689_v41, %v617_v39  ;;  %v577_v44 = vadd.f32 %v539_v42, %v513_v40  ;;  %v742_v39 = vld [vmem:[#allocation2 + $0x18] sm:$0xff] (%p734_p6)  ;;  %v804_v41 = vmul.f32 (%p734_p6), %v756_v32, %v756_v32 }
 0x197   : > { %v773_v35 = vld [vmem:[#allocation3 + $0x10] sm:$0xff] (%p734_p6)  ;;  %v1361_v42 = vmul.f32 (%p734_p6), 0.001953125, %v742_v39 }
 0x198   : > { %729 = vst.msk [vmem:[#allocation3 + $0x58] sm:$0xff] %vm589_vm2, %v713_v43  ;;  %594 = vst.msk [vmem:[#allocation2 + $0x20] sm:$0xff] %vm589_vm2, %v577_v44  ;;  %v789_v38 = vmul.f32 (%p734_p6), 0.001953125, %v773_v35 }
 0x199   : > { %v563_v47 = vpop.xlane.xlu0 %562  ;;  %v542_v48 = vpop.xlane.xlu1 %541 }
 0x19a   : > { %v585_v49 = vadd.f32 %v563_v47, %v521_v45  ;;  %v578_v50 = vadd.f32 %v542_v48, %v514_v46  ;;  %v819_v46 = vsub.f32 (%p734_p6), %v787_v29, %v803_v36  ;;  %v805_v47 = vmul.f32 (%p734_p6), %v757_v37, %v757_v37  ;;  %v1415_v29 = vld [vmem:[%s1728_s2 + $0x20] sm:$0xff] (%p734_p6) }
 0x19b   : > { %v774_v40 = vld [vmem:[#allocation3 + $0x18] sm:$0xff] (%p734_p6) }
 0x19c   : > { %602 = vst.msk [vmem:[#allocation2 + $0x60] sm:$0xff] %vm589_vm2, %v585_v49  ;;  %595 = vst.msk [vmem:[#allocation2 + $0x28] sm:$0xff] %vm589_vm2, %v578_v50  ;;  %v790_v43 = vmul.f32 (%p734_p6), 0.001953125, %v774_v40 }
 0x19d   : > { %v668_v53 = vpop.xlane.xlu0 %667  ;;  %v566_v54 = vpop.xlane.xlu1 %565 }
 0x19e   : > { %v706_v55 = vadd.f32 %v668_v53, %v610_v51  ;;  %v586_v56 = vadd.f32 %v566_v54, %v522_v52  ;;  %v820_v51 = vsub.f32 (%p734_p6), %v788_v33, %v804_v41  ;;  %v806_v52 = vmul.f32 (%p734_p6), %v1361_v42, %v1361_v42  ;;  %v781_v33 = vld [vmem:[#allocation3 + $0x50] sm:$0xff] (%p734_p6) }
 0x19f   : > { %v743_v44 = vld [vmem:[#allocation2 + $0x20] sm:$0xff] (%p734_p6) }
 0x1a0   : > { %722 = vst.msk [vmem:[#allocation3 + $0x20] sm:$0xff] %vm589_vm2, %v706_v55  ;;  %603 = vst.msk [vmem:[#allocation2 + $0x68] sm:$0xff] %vm589_vm2, %v586_v56  ;;  %v1363_v48 = vmul.f32 (%p734_p6), 0.001953125, %v743_v44  ;;  %v835_v55 = vadd.f32 (%p734_p6), 1e-05, %v819_v46  ;;  %v821_v56 = vsub.f32 (%p734_p6), %v789_v38, %v805_v47  ;;  %v750_v38 = vld [vmem:[#allocation2 + $0x58] sm:$0xff] (%p734_p6) }
 0x1a1   : > { %v692_v59 = vpop.xlane.xlu0 %691  ;;  %v671_v60 = vpop.xlane.xlu1 %670  ;;  %v1436_v46 = vld [vmem:[%s1728_s2 + $0x28] sm:$0xff] (%p734_p6) }
 0x1a2   : > { %v714_v61 = vadd.f32 %v692_v59, %v618_v57  ;;  %v707_v62 = vadd.f32 %v671_v60, %v611_v58  ;;  %v807_v57 = vmul.f32 (%p734_p6), %v1363_v48, %v1363_v48  ;;  %v836_v58 = vadd.f32 (%p734_p6), 1e-05, %v820_v51 }
 0x1a3   : > { %v744_v49 = vld [vmem:[#allocation2 + $0x28] sm:$0xff] (%p734_p6)  ;;  %v822_v59 = vsub.f32 (%p734_p6), %v790_v43, %v806_v52  ;;  %1106 = vrsqrt.f32 (%p734_p6), %v835_v55  ;;  %v751_v43 = vld [vmem:[#allocation2 + $0x60] sm:$0xff] (%p734_p6) }
 0x1a4   : > { %730 = vst.msk [vmem:[#allocation3 + $0x60] sm:$0xff] %vm589_vm2, %v714_v61  ;;  %723 = vst.msk [vmem:[#allocation3 + $0x28] sm:$0xff] %vm589_vm2, %v707_v62  ;;  %v1369_v60 = vmul.f32 (%p734_p6), 0.001953125, %v744_v49  ;;  %1108 = vrsqrt.f32 (%p734_p6), %v836_v58  ;;  %v797_v49 = vmul.f32 (%p734_p6), 0.001953125, %v781_v33 }
 0x1a5   : > { %v695_v1 = vpop.xlane.xlu1 %694  ;;  %v545_v2 = vpop.xlane.xlu0 %544 }
 0x1a6   : > { %v715_v3 = vadd.f32 %v695_v1, %v619_v63  ;;  %v579_v4 = vadd.f32 %v545_v2, %v515_v0  ;;  %v1374_v63 = vld [vmem:[%s1728_s2] sm:$0xff] (%p734_p6)  ;;  %v837_v0 = vadd.f32 (%p734_p6), 1e-05, %v821_v56  ;;  %v1447_v56 = vmul.f32 (%p734_p6), 0.001953125, %v751_v43 }
 0x1a7   : > { %v775_v45 = vld [vmem:[#allocation3 + $0x20] sm:$0xff] (%p734_p6) }
 0x1a8   : > { %731 = vst.msk [vmem:[#allocation3 + $0x68] sm:$0xff] %vm589_vm2, %v715_v3  ;;  %596 = vst.msk [vmem:[#allocation2 + $0x30] sm:$0xff] %vm589_vm2, %v579_v4  ;;  %v791_v53 = vmul.f32 (%p734_p6), 0.001953125, %v775_v45  ;;  %v838_v4 = vadd.f32 (%p734_p6), 1e-05, %v822_v59  ;;  %1110 = vrsqrt.f32 (%p734_p6), %v837_v0  ;;  %v1431_v45 = vmul.f32 (%p734_p6), %v1415_v29, %v1363_v48 }
 0x1a9   : > { %v569_v7 = vpop.xlane.xlu0 %568  ;;  %v548_v8 = vpop.xlane.xlu1 %547  ;;  %v1451_v59 = vmul.f32 (%p734_p6), %v1436_v46, %v1369_v60 }
 0x1aa   : > { %v587_v9 = vadd.f32 %v569_v7, %v523_v5  ;;  %v580_v10 = vadd.f32 %v548_v8, %v516_v6  ;;  %v823_v1 = vsub.f32 (%p734_p6), %v791_v53, %v807_v57  ;;  %v808_v5 = vmul.f32 (%p734_p6), %v1369_v60, %v1369_v60  ;;  %v747_v7 = vld [vmem:[#allocation2 + $0x40] sm:$0xff] (%p734_p6)  ;;  %v1383_v8 = vld [vmem:[%s1728_s2 + $0x8] sm:$0xff] (%p734_p6) }
 0x1ab   : > { %v776_v50 = vld [vmem:[#allocation3 + $0x28] sm:$0xff] (%p734_p6)  ;;  %1112 = vrsqrt.f32 (%p734_p6), %v838_v4  ;;  %v783_v44 = vld [vmem:[#allocation3 + $0x60] sm:$0xff] (%p734_p6)  ;;  %v1445_v53 = vmul.f32 (%p734_p6), 0.001953125, %v750_v38  ;;  %v815_v60 = vmul.f32 (%p734_p6), %v1447_v56, %v1447_v56 }
 0x1ac   : > { %604 = vst.msk [vmem:[#allocation2 + $0x70] sm:$0xff] %vm589_vm2, %v587_v9  ;;  %597 = vst.msk [vmem:[#allocation2 + $0x38] sm:$0xff] %vm589_vm2, %v580_v10  ;;  %v792_v61 = vmul.f32 (%p734_p6), 0.001953125, %v776_v50  ;;  %v839_v9 = vadd.f32 (%p734_p6), 1e-05, %v823_v1  ;;  %v1443_v50 = vld [vmem:[%s1728_s2 + $0x30] sm:$0xff] (%p734_p6) }
 0x1ad   : > { %v674_v13 = vpop.xlane.xlu0 %673  ;;  %v572_v14 = vpop.xlane.xlu1 %571  ;;  %v799_v57 = vmul.f32 (%p734_p6), 0.001953125, %v783_v44  ;;  %v1505_v38 = vld [vmem:[%s1728_s2 + $0x48] sm:$0xff] (%p734_p6) }
 0x1ae   : > { %v708_v15 = vadd.f32 %v674_v13, %v612_v11  ;;  %v588_v16 = vadd.f32 %v572_v14, %v524_v12  ;;  %v779_v12 = vld [vmem:[#allocation3 + $0x40] sm:$0xff] (%p734_p6)  ;;  %v1388_v13 = vmul.f32 (%p734_p6), %v1374_v63, %v755_v28  ;;  %v1393_v14 = vld [vmem:[%s1728_s2 + $0x10] sm:$0xff] (%p734_p6)  ;;  %1114 = vrsqrt.f32 (%p734_p6), %v839_v9 }
 0x1af   : > { %v745_v54 = vld [vmem:[#allocation2 + $0x30] sm:$0xff] (%p734_p6)  ;;  %v795_v27 = vmul.f32 (%p734_p6), 0.001953125, %v779_v12  ;;  %v1410_v28 = vmul.f32 (%p734_p6), %v1393_v14, %v757_v37  ;;  %v782_v37 = vld [vmem:[#allocation3 + $0x58] sm:$0xff] (%p734_p6)  ;;  %v784_v58 = vld [vmem:[#allocation3 + $0x68] sm:$0xff] (%p734_p6) }
 0x1b0   : > { %724 = vst.msk [vmem:[#allocation3 + $0x30] sm:$0xff] %vm589_vm2, %v708_v15  ;;  %605 = vst.msk [vmem:[#allocation2 + $0x78] sm:$0xff] %vm589_vm2, %v588_v16  ;;  %v1376_v2 = vmul.f32 (%p734_p6), 0.001953125, %v745_v54  ;;  %v824_v15 = vsub.f32 (%p734_p6), %v792_v61, %v808_v5  ;;  %v798_v48 = vmul.f32 (%p734_p6), 0.001953125, %v782_v37  ;;  %v752_v54 = vld [vmem:[#allocation2 + $0x68] sm:$0xff] (%p734_p6)  ;;  %v1107_v0 = vpop.eup (%p734_p6), %1106 }
 0x1b1   : > { %v698_v19 = vpop.xlane.xlu0 %697  ;;  %v677_v20 = vpop.xlane.xlu1 %676  ;;  %v1466_v5 = vmul.f32 (%p734_p6), 0.001953125, %v752_v54  ;;  %v899_v9 = vmul.f32 (%p734_p6), %v1107_v0, %v1374_v63 }
 0x1b2   : > { %v716_v21 = vadd.f32 %v698_v19, %v620_v17  ;;  %v709_v22 = vadd.f32 %v677_v20, %v613_v18  ;;  %v809_v11 = vmul.f32 (%p734_p6), %v1376_v2, %v1376_v2  ;;  %v748_v17 = vld [vmem:[#allocation2 + $0x48] sm:$0xff] (%p734_p6)  ;;  %v1397_v20 = vmul.f32 (%p734_p6), 0.001953125, %v747_v7  ;;  %v1109_v7 = vpop.eup (%p734_p6), %1108 }
 0x1b3   : > { %v746_v3 = vld [vmem:[#allocation2 + $0x38] sm:$0xff] (%p734_p6)  ;;  %v1457_v1 = vmul.f32 (%p734_p6), %v1443_v50, %v1376_v2  ;;  %915 = vst.msk [vmem:[%s1730_s4] sm:$0xff] (%p734_p6), %vm589_vm2, %v899_v9 }
 0x1b4   : > { %732 = vst.msk [vmem:[#allocation3 + $0x70] sm:$0xff] %vm589_vm2, %v716_v21  ;;  %725 = vst.msk [vmem:[#allocation3 + $0x38] sm:$0xff] %vm589_vm2, %v709_v22  ;;  %738 = sbr.rel (!%p734_p6) target bundleno = 480 (0x1e0), region = 44  ;;  %v1395_v16 = vmul.f32 (%p734_p6), 0.001953125, %v746_v3  ;;  %v780_v21 = vld [vmem:[#allocation3 + $0x48] sm:$0xff] (%p734_p6)  ;;  %v749_v22 = vld [vmem:[#allocation2 + $0x50] sm:$0xff] (%p734_p6)  ;;  %v811_v31 = vmul.f32 (%p734_p6), %v1397_v20, %v1397_v20 }
 0x1b5   : > { %v701_v24 = vpop.xlane.xlu1 %700  ;;  %v796_v35 = vmul.f32 (%p734_p6), 0.001953125, %v780_v21  ;;  %v1421_v36 = vmul.f32 (%p734_p6), 0.001953125, %v749_v22  ;;  %v1462_v3 = vld [vmem:[%s1728_s2 + $0x38] sm:$0xff] (%p734_p6)  ;;  %v1111_v12 = vpop.eup (%p734_p6), %1110 }
 0x1b6   : > { %v717_v25 = vadd.f32 %v701_v24, %v621_v23  ;;  %v1400_v23 = vmul.f32 (%p734_p6), %v1383_v8, %v756_v32  ;;  %v1405_v24 = vld [vmem:[%s1728_s2 + $0x18] sm:$0xff] (%p734_p6)  ;;  %v810_v26 = vmul.f32 (%p734_p6), %v1395_v16, %v1395_v16  ;;  %v1419_v32 = vmul.f32 (%p734_p6), 0.001953125, %v748_v17  ;;  %v1473_v17 = vld [vmem:[%s1728_s2 + $0x40] sm:$0xff] (%p734_p6) }
 0x1b7   : > { %v777_v62 = vld [vmem:[#allocation3 + $0x30] sm:$0xff] (%p734_p6)  ;;  %v1425_v39 = vmul.f32 (%p734_p6), %v1405_v24, %v1361_v42  ;;  %v827_v40 = vsub.f32 (%p734_p6), %v795_v27, %v811_v31  ;;  %v813_v42 = vmul.f32 (%p734_p6), %v1421_v36, %v1421_v36  ;;  %v901_v63 = vmul.f32 (%p734_p6), %v1111_v12, %v1393_v14 }
 0x1b8   : > { %733 = vst.msk [vmem:[#allocation3 + $0x78] sm:$0xff] %vm589_vm2, %v717_v25  ;;  %v793_v10 = vmul.f32 (%p734_p6), 0.001953125, %v777_v62  ;;  %v840_v25 = vadd.f32 (%p734_p6), 1e-05, %v824_v15  ;;  %v812_v41 = vmul.f32 (%p734_p6), %v1419_v32, %v1419_v32  ;;  %v814_v62 = vmul.f32 (%p734_p6), %v1445_v53, %v1445_v53  ;;  %v1113_v21 = vpop.eup (%p734_p6), %1112 }
 0x1b9   : > { %v843_v51 = vadd.f32 1e-05, %v827_v40  ;;  %v829_v55 = vsub.f32 %v797_v49, %v813_v42  ;;  %v900_v15 = vmul.f32 %v1109_v7, %v1383_v8  ;;  %v1484_v8 = vmul.f32 %v1462_v3, %v1395_v16  ;;  %917 = vst.msk [vmem:[%s1730_s4 + $0x10] sm:$0xff] %vm589_vm2, %v901_v63  ;;  %v883_v40 = vld [vmem:[%s1729_s3] sm:$0xff]  ;;  %v885_v42 = vld [vmem:[%s1729_s3 + $0x10] sm:$0xff] }
 0x1ba   : > { %v825_v18 = vsub.f32 %v793_v10, %v809_v11  ;;  %1116 = vrsqrt.f32 %v840_v25  ;;  %v828_v52 = vsub.f32 %v796_v35, %v812_v41  ;;  %v830_v10 = vsub.f32 %v798_v48, %v814_v62  ;;  %v884_v41 = vld [vmem:[%s1729_s3 + $0x8] sm:$0xff] }
 0x1bb   : > { %v778_v6 = vld [vmem:[#allocation3 + $0x38] sm:$0xff]  ;;  %v845_v4 = vadd.f32 1e-05, %v829_v55  ;;  %v800_v11 = vmul.f32 0.001953125, %v784_v58  ;;  %v785_v2 = vld [vmem:[#allocation3 + $0x70] sm:$0xff]  ;;  %916 = vst.msk [vmem:[%s1730_s4 + $0x8] sm:$0xff] %vm589_vm2, %v900_v15  ;;  %v902_v31 = vmul.f32 %v1113_v21, %v1405_v24  ;;  %v1500_v35 = vmul.f32 %v1473_v17, %v1397_v20 }
 0x1bc   : > { %v794_v19 = vmul.f32 0.001953125, %v778_v6  ;;  %v841_v30 = vadd.f32 1e-05, %v825_v18  ;;  %v844_v61 = vadd.f32 1e-05, %v828_v52  ;;  %v753_v6 = vld [vmem:[#allocation2 + $0x70] sm:$0xff]  ;;  %v831_v18 = vsub.f32 %v799_v57, %v815_v60 }
 0x1bd   : > { %v846_v22 = vadd.f32 1e-05, %v830_v10  ;;  %v1486_v25 = vmul.f32 0.001953125, %v753_v6  ;;  %v801_v14 = vmul.f32 0.001953125, %v785_v2  ;;  %918 = vst.msk [vmem:[%s1730_s4 + $0x18] sm:$0xff] %vm589_vm2, %v902_v31  ;;  %v948_v49 = vmul.f32 %v1109_v7, %v1400_v23  ;;  %v877_v55 = vld [vmem:[%s1728_s2 + $0x50] sm:$0xff] }
 0x1be   : > { %v826_v34 = vsub.f32 %v794_v19, %v810_v26  ;;  %1118 = vrsqrt.f32 %v841_v30  ;;  %v816_v19 = vmul.f32 %v1466_v5, %v1466_v5  ;;  %v754_v26 = vld [vmem:[#allocation2 + $0x78] sm:$0xff]  ;;  %v1115_v30 = vpop.eup %1114  ;;  %v847_v33 = vadd.f32 1e-05, %v831_v18  ;;  %v889_v60 = vld [vmem:[%s1729_s3 + $0x30] sm:$0xff] }
 0x1bf   : > { %v786_v27 = vld [vmem:[#allocation3 + $0x78] sm:$0xff]  ;;  %v903_v16 = vmul.f32 %v1115_v30, %v1415_v29  ;;  %v817_v24 = vmul.f32 %v1486_v25, %v1486_v25  ;;  %v1513_v37 = vmul.f32 0.001953125, %v754_v26  ;;  %v940_v54 = vmul.f32 %v1505_v38, %v1419_v32  ;;  %v887_v32 = vld [vmem:[%s1729_s3 + $0x20] sm:$0xff] }
 0x1c0   : > { %v842_v47 = vadd.f32 1e-05, %v826_v34  ;;  %v832_v34 = vsub.f32 %v800_v11, %v816_v19  ;;  %v802_v20 = vmul.f32 0.001953125, %v786_v27  ;;  %v941_v7 = vmul.f32 %v877_v55, %v1421_v36  ;;  %v878_v36 = vld [vmem:[%s1728_s2 + $0x58] sm:$0xff] }
 0x1c1   : > { %919 = vst.msk [vmem:[%s1730_s4 + $0x20] sm:$0xff] %vm589_vm2, %v903_v16  ;;  %v833_v44 = vsub.f32 %v801_v14, %v817_v24  ;;  %v942_v27 = vmul.f32 %v878_v36, %v1445_v53  ;;  %v893_v53 = vld [vmem:[%s1729_s3 + $0x50] sm:$0xff] }
 0x1c2   : > { %1120 = vrsqrt.f32 %v842_v47  ;;  %v848_v29 = vadd.f32 1e-05, %v832_v34  ;;  %v947_v47 = vmul.f32 %v1107_v0, %v1388_v13  ;;  %v818_v13 = vmul.f32 %v1513_v37, %v1513_v37 }
 0x1c3   : > { %1122 = vrsqrt.f32 %v843_v51  ;;  %v949_v51 = vmul.f32 %v1111_v12, %v1410_v28  ;;  %v849_v57 = vadd.f32 1e-05, %v833_v44  ;;  %v886_v28 = vld [vmem:[%s1729_s3 + $0x18] sm:$0xff]  ;;  %v951_v0 = vmul.f32 %v1115_v30, %v1431_v45  ;;  %v880_v30 = vld [vmem:[%s1728_s2 + $0x68] sm:$0xff]  ;;  %v895_v44 = vld [vmem:[%s1729_s3 + $0x60] sm:$0xff] }
 0x1c4   : > { %1124 = vrsqrt.f32 %v844_v61  ;;  %v963_v58 = vsub.f32 %v883_v40, %v947_v47  ;;  %v964_v61 = vsub.f32 %v884_v41, %v948_v49  ;;  %v894_v40 = vld [vmem:[%s1729_s3 + $0x58] sm:$0xff] }
 0x1c5   : > { %1126 = vrsqrt.f32 %v845_v4  ;;  %v965_v62 = vsub.f32 %v885_v42, %v949_v51  ;;  %v888_v4 = vld [vmem:[%s1729_s3 + $0x28] sm:$0xff]  ;;  %v967_v12 = vsub.f32 %v887_v32, %v951_v0 }
 0x1c6   : > { %1128 = vrsqrt.f32 %v846_v22  ;;  %979 = vst.msk [vmem:[%s1731_s5] sm:$0xff] %vm589_vm2, %v963_v58  ;;  %980 = vst.msk [vmem:[%s1731_s5 + $0x8] sm:$0xff] %vm589_vm2, %v964_v61  ;;  %v897_v61 = vld [vmem:[%s1729_s3 + $0x70] sm:$0xff] }
 0x1c7   : > { %1130 = vrsqrt.f32 %v847_v33  ;;  %v1117_v43 = vpop.eup %1116  ;;  %981 = vst.msk [vmem:[%s1731_s5 + $0x10] sm:$0xff] %vm589_vm2, %v965_v62  ;;  %983 = vst.msk [vmem:[%s1731_s5 + $0x20] sm:$0xff] %vm589_vm2, %v967_v12  ;;  %v898_v62 = vld [vmem:[%s1729_s3 + $0x78] sm:$0xff] }
 0x1c8   : > { %v904_v48 = vmul.f32 %v1117_v43, %v1436_v46  ;;  %1132 = vrsqrt.f32 %v848_v29  ;;  %v834_v46 = vsub.f32 %v802_v20, %v818_v13  ;;  %v881_v29 = vld [vmem:[%s1728_s2 + $0x70] sm:$0xff] }
 0x1c9   : > { %1134 = vrsqrt.f32 %v849_v57  ;;  %v945_v51 = vmul.f32 %v881_v29, %v1486_v25 }
 0x1ca   : > { %920 = vst.msk [vmem:[%s1730_s4 + $0x28] sm:$0xff] %vm589_vm2, %v904_v48  ;;  %v850_v11 = vadd.f32 1e-05, %v834_v46 }
 0x1cb   : > { %v1119_v52 = vpop.eup %1118 }
 0x1cc   : > { %v905_v23 = vmul.f32 %v1119_v52, %v1443_v50  ;;  %v950_v50 = vmul.f32 %v1113_v21, %v1425_v39  ;;  %v952_v39 = vmul.f32 %v1117_v43, %v1451_v59  ;;  %v953_v45 = vmul.f32 %v1119_v52, %v1457_v1  ;;  %v890_v59 = vld [vmem:[%s1729_s3 + $0x38] sm:$0xff]  ;;  %v891_v21 = vld [vmem:[%s1729_s3 + $0x40] sm:$0xff] }
 0x1cd   : > { %1136 = vrsqrt.f32 %v850_v11  ;;  %v882_v52 = vld [vmem:[%s1728_s2 + $0x78] sm:$0xff] }
 0x1ce   : > { %921 = vst.msk [vmem:[%s1730_s4 + $0x30] sm:$0xff] %vm589_vm2, %v905_v23  ;;  %v966_v2 = vsub.f32 %v886_v28, %v950_v50  ;;  %v968_v15 = vsub.f32 %v888_v4, %v952_v39  ;;  %v969_v18 = vsub.f32 %v889_v60, %v953_v45  ;;  %v946_v57 = vmul.f32 %v882_v52, %v1513_v37 }
 0x1cf   : > { %v1121_v6 = vpop.eup %1120 }
 0x1d0   : > { %v1123_v9 = vpop.eup %1122  ;;  %v906_v10 = vmul.f32 %v1121_v6, %v1462_v3  ;;  %v879_v3 = vld [vmem:[%s1728_s2 + $0x60] sm:$0xff]  ;;  %v954_v19 = vmul.f32 %v1121_v6, %v1484_v8  ;;  %982 = vst.msk [vmem:[%s1731_s5 + $0x18] sm:$0xff] %vm589_vm2, %v966_v2  ;;  %v892_v8 = vld [vmem:[%s1729_s3 + $0x48] sm:$0xff]  ;;  %984 = vst.msk [vmem:[%s1731_s5 + $0x28] sm:$0xff] %vm589_vm2, %v968_v15 }
 0x1d1   : > { %v907_v1 = vmul.f32 %v1123_v9, %v1473_v17  ;;  %v1125_v63 = vpop.eup %1124  ;;  %v955_v17 = vmul.f32 %v1123_v9, %v1500_v35  ;;  %985 = vst.msk [vmem:[%s1731_s5 + $0x30] sm:$0xff] %vm589_vm2, %v969_v18  ;;  %v943_v14 = vmul.f32 %v879_v3, %v1447_v56  ;;  %v944_v56 = vmul.f32 %v880_v30, %v1466_v5 }
 0x1d2   : > { %922 = vst.msk [vmem:[%s1730_s4 + $0x38] sm:$0xff] %vm589_vm2, %v906_v10  ;;  %v1127_v22 = vpop.eup %1126  ;;  %v908_v26 = vmul.f32 %v1125_v63, %v1505_v38  ;;  %v970_v31 = vsub.f32 %v890_v59, %v954_v19  ;;  %v956_v33 = vmul.f32 %v1125_v63, %v940_v54  ;;  %v896_v54 = vld [vmem:[%s1729_s3 + $0x68] sm:$0xff] }
 0x1d3   : > { %923 = vst.msk [vmem:[%s1730_s4 + $0x40] sm:$0xff] %vm589_vm2, %v907_v1  ;;  %v909_v34 = vmul.f32 %v1127_v22, %v877_v55  ;;  %v971_v16 = vsub.f32 %v891_v21, %v955_v17  ;;  %v957_v35 = vmul.f32 %v1127_v22, %v941_v7  ;;  %v1129_v24 = vpop.eup %1128 }
 0x1d4   : > { %924 = vst.msk [vmem:[%s1730_s4 + $0x48] sm:$0xff] %vm589_vm2, %v908_v26  ;;  %986 = vst.msk [vmem:[%s1731_s5 + $0x38] sm:$0xff] %vm589_vm2, %v970_v31  ;;  %v972_v38 = vsub.f32 %v892_v8, %v956_v33  ;;  %v1131_v41 = vpop.eup %1130  ;;  %v910_v43 = vmul.f32 %v1129_v24, %v878_v36  ;;  %v958_v5 = vmul.f32 %v1129_v24, %v942_v27 }
 0x1d5   : > { %925 = vst.msk [vmem:[%s1730_s4 + $0x50] sm:$0xff] %vm589_vm2, %v909_v34  ;;  %987 = vst.msk [vmem:[%s1731_s5 + $0x40] sm:$0xff] %vm589_vm2, %v971_v16  ;;  %v973_v20 = vsub.f32 %v893_v53, %v957_v35  ;;  %v911_v47 = vmul.f32 %v1131_v41, %v879_v3  ;;  %v959_v49 = vmul.f32 %v1131_v41, %v943_v14  ;;  %v1133_v42 = vpop.eup %1132 }
 0x1d6   : > { %988 = vst.msk [vmem:[%s1731_s5 + $0x48] sm:$0xff] %vm589_vm2, %v972_v38  ;;  %926 = vst.msk [vmem:[%s1730_s4 + $0x58] sm:$0xff] %vm589_vm2, %v910_v43  ;;  %v974_v48 = vsub.f32 %v894_v40, %v958_v5  ;;  %v912_v55 = vmul.f32 %v1133_v42, %v880_v30  ;;  %v960_v23 = vmul.f32 %v1133_v42, %v944_v56  ;;  %v1135_v25 = vpop.eup %1134 }
 0x1d7   : > { %989 = vst.msk [vmem:[%s1731_s5 + $0x50] sm:$0xff] %vm589_vm2, %v973_v20  ;;  %927 = vst.msk [vmem:[%s1730_s4 + $0x60] sm:$0xff] %vm589_vm2, %v911_v47  ;;  %v975_v13 = vsub.f32 %v895_v44, %v959_v49  ;;  %v913_v28 = vmul.f32 %v1135_v25, %v881_v29  ;;  %v961_v32 = vmul.f32 %v1135_v25, %v945_v51 }
 0x1d8   : > { %990 = vst.msk [vmem:[%s1731_s5 + $0x58] sm:$0xff] %vm589_vm2, %v974_v48  ;;  %928 = vst.msk [vmem:[%s1730_s4 + $0x68] sm:$0xff] %vm589_vm2, %v912_v55  ;;  %v976_v58 = vsub.f32 %v896_v54, %v960_v23 }
 0x1d9   : > { %991 = vst.msk [vmem:[%s1731_s5 + $0x60] sm:$0xff] %vm589_vm2, %v975_v13  ;;  %929 = vst.msk [vmem:[%s1730_s4 + $0x70] sm:$0xff] %vm589_vm2, %v913_v28  ;;  %v977_v37 = vsub.f32 %v897_v61, %v961_v32 }
 0x1da   : > { %992 = vst.msk [vmem:[%s1731_s5 + $0x68] sm:$0xff] %vm589_vm2, %v976_v58  ;;  %v1137_v46 = vpop.eup %1136 }
 0x1db   : > { %v914_v50 = vmul.f32 %v1137_v46, %v882_v52  ;;  %v962_v0 = vmul.f32 %v1137_v46, %v946_v57  ;;  %993 = vst.msk [vmem:[%s1731_s5 + $0x70] sm:$0xff] %vm589_vm2, %v977_v37 }
 0x1dd   : > { %930 = vst.msk [vmem:[%s1730_s4 + $0x78] sm:$0xff] %vm589_vm2, %v914_v50  ;;  %v978_v4 = vsub.f32 %v898_v62, %v962_v0 }
 0x1df   : > { %994 = vst.msk [vmem:[%s1731_s5 + $0x78] sm:$0xff] %vm589_vm2, %v978_v4 }
 0x1e0 PF: > { %s16_s20 = sadd.s32 1, %s1160_s20   ;;  %s1732_s18 = smov %s1156_s19 }
 0x1e1   : > { %p13_p7 = scmp.ge.s32.totalorder %s16_s20, 4   ;;  %s1733_s19 = smov %s1735_s21 }
 0x1e3   :  { %15 = sbr.rel (!%p13_p7) target bundleno = 2 (0x2), region = 78 }

</bundles_post_ra>
